<compile_context>
chip_gen: v5e
topology: v5e:2x2
jax: 0.10.0
libtpu: 0.0.40
codegen_flags: <defaults>
</compile_context>

<pallas_src>
from functools import partial

import jax
import jax.numpy as jnp
from jax.experimental import pallas as pl
from jax.experimental.pallas import tpu as pltpu


def _uniform_gaussian_scale_kernel(u_ref, scale_ref, z_ref):
    """z = (u - 0.5) * scale.  u/z blocks are (TM, L); scale is (1, L), broadcast over rows."""
    z_ref[...] = (u_ref[...] - 0.5) * scale_ref[...]


def _scale_rows_pallas(u2d, scale_row, tile_rows=2048):
    """Elementwise (u2d - 0.5) * scale_row[None, :] via a row-tiled pallas_call."""
    rows, d = u2d.shape
    tm = rows if rows <= tile_rows else tile_rows
    grid = (pl.cdiv(rows, tm),)
    cost = pl.CostEstimate(
        flops=2 * rows * d,
        transcendentals=0,
        bytes_accessed=2 * rows * d * 4 + d * 4,
    )
    return pl.pallas_call(
        _uniform_gaussian_scale_kernel,
        out_shape=jax.ShapeDtypeStruct((rows, d), jnp.float32),
        grid=grid,
        in_specs=[
            pl.BlockSpec((tm, d), lambda i: (i, 0)),
            pl.BlockSpec((1, d), lambda i: (0, 0)),
        ],
        out_specs=pl.BlockSpec((tm, d), lambda i: (i, 0)),
        compiler_params=pltpu.CompilerParams(
            dimension_semantics=("parallel",),
        ),
        cost_estimate=cost,
        input_output_aliases={0: 0},   # reuse the uniform slab buffer for z
    )(u2d, scale_row.reshape(1, d))


def _scale_uniforms_pallas(u, scale, tile_rows=2048):
    """(u - 0.5) * scale with a lane-dense repack when ndim divides 128."""
    num_samples, ndim = u.shape
    if ndim <= 128 and 128 % ndim == 0:
        spr = 128 // ndim                          # samples packed per 128-lane row
        n_pad = ((num_samples + spr - 1) // spr) * spr
        if n_pad != num_samples:
            u = jnp.pad(u, ((0, n_pad - num_samples), (0, 0)))
        u2d = u.reshape(n_pad * ndim // 128, 128)  # free bitcast (row-major contiguous)
        scale_row = jnp.tile(scale, spr)           # lane j -> scale[j % ndim]
        z2d = _scale_rows_pallas(u2d, scale_row, tile_rows)
        return z2d.reshape(n_pad, ndim)[:num_samples]
    # TODO(synk): ndim not a divisor of 128 -> feature dim stays on lanes (masked stores).
    return _scale_rows_pallas(u, scale, tile_rows)


def _build_index_buffers(ndim, ind):
    """Mirror the module __init__ buffers (ind, ind_, inv_perm) as static tuples."""
    if isinstance(ind, int):
        ind = [ind]
    ind = [int(i) for i in ind]
    ind_ = [i for i in range(ndim) if i not in ind]
    perm = ind + ind_
    inv_perm = [0] * ndim
    for i, p in enumerate(perm):
        inv_perm[p] = i
    return tuple(ind), tuple(ind_), tuple(inv_perm)


def _draw_uniforms(num_samples, n_u, n_g, inv_perm, key):
    """Raw uniforms with the reference structure: split draw, concat, inv_perm gather."""
    ku, kg = jax.random.split(key)
    u_u = jax.random.uniform(ku, (num_samples, n_u), jnp.float32)
    u_g = jax.random.uniform(kg, (num_samples, n_g), jnp.float32)
    u = jnp.concatenate([u_u, u_g], axis=-1)
    return u[..., jnp.asarray(inv_perm, jnp.int32)]


@partial(jax.jit, static_argnums=(0, 2, 3, 4))
def _forward_impl(num_samples, scale, ind, ind_, inv_perm, key):
    u = _draw_uniforms(num_samples, len(ind), len(ind_), inv_perm, key)
    z = _scale_uniforms_pallas(u, scale)
    # log_prob is a per-call constant: sum_{i in ind} -log(scale[i]).
    log_p_val = -jnp.sum(jnp.log(scale[jnp.asarray(ind, jnp.int32)]))
    log_p = jnp.full((num_samples,), log_p_val, jnp.float32)
    return z, log_p


def uniform_gaussian_forward(num_samples, scale, ind, key):
    """Mirrors UniformGaussian.forward(num_samples) -> (z, log_p)."""
    scale = jnp.asarray(scale, jnp.float32)
    ndim = int(scale.shape[0])
    ind_t, ind_t_, inv_perm_t = _build_index_buffers(ndim, ind)
    return _forward_impl(num_samples, scale, ind_t, ind_t_, inv_perm_t, key)


if __name__ == "__main__":
    # Module config: ndim dims, `ind` are the uniform entries, the rest "Gaussian".
    ndim = 8
    ind = [0, 2, 5]
    num_samples = 128

    key = jax.random.PRNGKey(0)
    kscale, ksample = jax.random.split(key)
    scale = jax.random.uniform(kscale, (ndim,), jnp.float32, minval=0.5, maxval=1.5)

    z, log_p = uniform_gaussian_forward(num_samples, scale, ind, ksample)
    z = jax.block_until_ready(z)
    log_p = jax.block_until_ready(log_p)

    # --- checks against the reference semantics -----------------------------
    assert z.shape == (num_samples, ndim) and z.dtype == jnp.float32
    assert log_p.shape == (num_samples,) and log_p.dtype == jnp.float32

    # exact elementwise reference for the Pallas part (same uniform stream)
    ind_t, ind_t_, inv_perm_t = _build_index_buffers(ndim, ind)
    u_ref = _draw_uniforms(num_samples, len(ind_t), len(ind_t_), inv_perm_t, ksample)
    z_ref = scale[None, :] * (u_ref - 0.5)
    assert jnp.allclose(z, z_ref, rtol=1e-6, atol=1e-6)

    expected_logp = -jnp.sum(jnp.log(scale[jnp.asarray(ind)]))
    assert jnp.allclose(log_p, expected_logp, rtol=1e-5, atol=1e-5)

    # samples must lie in scale * (-0.5, 0.5)
    half = 0.5 * scale + 1e-6
    assert bool(jnp.all(jnp.abs(z) <= half[None, :]))

    print("KERNEL_OK")
</pallas_src>

<mosaic_0001>
module attributes {stable_mosaic.version = 11 : i64} {
  func.func @_uniform_gaussian_scale_kernel(%arg0: i32, %arg1: memref<8x128xf32, #tpu.memory_space<vmem>>, %arg2: memref<1x128xf32, #tpu.memory_space<vmem>>, %arg3: memref<8x128xf32, #tpu.memory_space<vmem>>) attributes {dimension_semantics = [#tpu.dimension_semantics<parallel>], iteration_bounds = array<i64: 1>, scalar_prefetch = 0 : i64, scratch_operands = 0 : i64, tpu.core_type = #tpu.core_type<tc>, window_params = [{transform_indices = @transform_0, window_bounds = array<i64: 8, 128>}, {pipeline_mode = #tpu.pipeline_mode<synchronous>, transform_indices = @transform_1, window_bounds = array<i64: 1, 128>}, {transform_indices = @transform_2, window_bounds = array<i64: 8, 128>}]} {
    %c0 = arith.constant 0 : index
    %c0_0 = arith.constant 0 : index
    %0 = vector.load %arg1[%c0, %c0_0] : memref<8x128xf32, #tpu.memory_space<vmem>>, vector<8x128xf32>
    %cst = arith.constant 5.000000e-01 : f32
    %1 = vector.broadcast %cst : f32 to vector<8x128xf32>
    %2 = arith.subf %0, %1 : vector<8x128xf32>
    %c0_1 = arith.constant 0 : index
    %c0_2 = arith.constant 0 : index
    %3 = vector.load %arg2[%c0_1, %c0_2] : memref<1x128xf32, #tpu.memory_space<vmem>>, vector<1x128xf32>
    %4 = vector.broadcast %3 : vector<1x128xf32> to vector<8x128xf32>
    %5 = arith.mulf %2, %4 : vector<8x128xf32>
    %c0_3 = arith.constant 0 : index
    %c0_4 = arith.constant 0 : index
    %6 = vector.load %arg3[%c0_3, %c0_4] : memref<8x128xf32, #tpu.memory_space<vmem>>, vector<8x128xf32>
    tpu.vector_store %arg3[%c0_3, %c0_4], %5 {strides = array<i32>} : memref<8x128xf32, #tpu.memory_space<vmem>>, vector<8x128xf32>,
    return
  }
  func.func @transform_0(%arg0: i32) -> (i32, i32) {
    %c0_i32 = arith.constant 0 : i32
    %c0_i32_0 = arith.constant 0 : i32
    return %arg0, %c0_i32 : i32, i32
  }
  func.func @transform_1(%arg0: i32) -> (i32, i32) {
    %c0_i32 = arith.constant 0 : i32
    %c0_i32_0 = arith.constant 0 : i32
    %c0_i32_1 = arith.constant 0 : i32
    return %c0_i32, %c0_i32_0 : i32, i32
  }
  func.func @transform_2(%arg0: i32) -> (i32, i32) {
    %c0_i32 = arith.constant 0 : i32
    %c0_i32_0 = arith.constant 0 : i32
    return %arg0, %c0_i32 : i32, i32
  }
}

</mosaic_0001>

<bundles_post_ra>
// kernel: tile.8
= control target key start
LH: loop header
LB: loop body
LE: loop exit
PB: predicated region body
PF: predicated region fallthrough
CT: control target
= control target key end

     0   :  { %s28_s0 = inlined_call_operand.vmem [shape: f32[8], index: 0, kind: input, shape index: {}]   ;;  %s29_s1 = inlined_call_operand.vmem [shape: f32[16,8], index: 1, kind: output, shape index: {}]  }
   0x1   :  { %v4_v0 = vld [vmem:[%s28_s0] ss:$0 sm:$0xff] }
   0x2   :  { %5 = vst [vmem:[%s29_s1] sm:$0xff] %v4_v0 }
   0x3   :  { %8 = vst [vmem:[%s29_s1 + $0x8] sm:$0xff] %v4_v0 }

// kernel: tile.9
= control target key start
LH: loop header
LB: loop body
LE: loop exit
PB: predicated region body
PF: predicated region fallthrough
CT: control target
= control target key end

     0   :  { %s131_s10 = smov 120   ;;  %s132_s11 = smov 104   ;;  %vm3_vm0 = vcmask 64512   ;;  %vm9_vm1 = vcmask 1048512   ;;  %vm15_vm2 = vcmask 982912   ;;  %vm21_vm3 = vcmask 917312   ;;  %s207_s0 = inlined_call_operand.vmem [shape: f32[16,8], index: 0, kind: input, shape index: {}]   ;;  %s208_s1 = inlined_call_operand.vmem [shape: f32[1,128], index: 1, kind: output, shape index: {}]  }
   0x1   :  { %v101_v0 = vld [vmem:[%s207_s0 + $0xf] sm:$0x1]   ;;  %v103_v1 = vld [vmem:[%s207_s0 + $0xd] sm:$0x1]   ;;  %v105_v2 = vld [vmem:[%s207_s0 + $0xb] sm:$0x1]  }
   0x2   :  { %7 = vrot.lane.b32.xlu0 %v101_v0, %s131_s10  ;;  %19 = vrot.lane.b32.xlu1 %v103_v1, %s132_s11  ;;  %s133_s14 = smov 88   ;;  %v102_v3 = vld [vmem:[%s207_s0 + $0xe] sm:$0x1]   ;;  %v104_v4 = vld [vmem:[%s207_s0 + $0xc] sm:$0x1]   ;;  %s134_s19 = smov 112  }
   0x3   :  { %31 = vrot.lane.b32.xlu2 %v105_v2, %s133_s14  ;;  %s135_s20 = smov 96   ;;  %v106_v5 = vld [vmem:[%s207_s0 + $0xa] sm:$0x1]   ;;  %s136_s23 = smov 80   ;;  %v107_v6 = vld [vmem:[%s207_s0 + $0x9] sm:$0x1]  }
   0x4   :  { %v108_v7 = vld [vmem:[%s207_s0 + $0x8] sm:$0x1]   ;;  %s137_s28 = smov 72   ;;  %s138_s29 = smov 64   ;;  %v109_v8 = vld [vmem:[%s207_s0 + $0x7] sm:$0x1]  }
   0x5   :  { %s139_s3 = smov 56   ;;  %v110_v9 = vld [vmem:[%s207_s0 + $0x6] sm:$0x1]   ;;  %v111_v10 = vld [vmem:[%s207_s0 + $0x5] sm:$0x1]   ;;  %s140_s8 = smov 48  }
   0x6   :  { %s141_s9 = smov 40   ;;  %v112_v11 = vld [vmem:[%s207_s0 + $0x4] sm:$0x1]   ;;  %s142_s12 = smov 32   ;;  %v113_v12 = vld [vmem:[%s207_s0 + $0x3] sm:$0x1]  }
   0x7   :  { %v114_v13 = vld [vmem:[%s207_s0 + $0x2] sm:$0x1]   ;;  %s143_s17 = smov 24   ;;  %s144_s18 = smov 16   ;;  %v115_v14 = vld [vmem:[%s207_s0 + $0x1] sm:$0x1]  }
   0x8   :  { %s145_s21 = smov 8   ;;  %v2_v15 = vld [vmem:[%s207_s0] sm:$0x1]   ;;  %vm27_vm4 = vcmask 851712   ;;  %vm33_vm5 = vcmask 786112   ;;  %vm39_vm6 = vcmask 720512  }
   0x9   :  { %4 = vst.msk [vmem:[#allocation0] sm:$0x1] %vm3_vm0, %v2_v15   ;;  %vm45_vm7 = vcmask 654912   ;;  %vm51_vm8 = vcmask 589312   ;;  %vm57_vm9 = vcmask 523712   ;;  %vm63_vm10 = vcmask 458112  }
   0xa   :  { %13 = vrot.lane.b32.xlu0 %v102_v3, %s134_s19  ;;  %25 = vrot.lane.b32.xlu1 %v104_v4, %s135_s20  ;;  %vm69_vm11 = vcmask 392512   ;;  %vm75_vm12 = vcmask 326912   ;;  %vm81_vm13 = vcmask 261312   ;;  %vm87_vm14 = vcmask 195712  }
   0xb   :  { %37 = vrot.lane.b32.xlu2 %v106_v5, %s136_s23  ;;  %vm93_vm15 = vcmask 130112  }
  0x12   :  { %43 = vrot.lane.b32.xlu0 %v107_v6, %s137_s28  ;;  %49 = vrot.lane.b32.xlu1 %v108_v7, %s138_s29 }
  0x13   :  { %55 = vrot.lane.b32.xlu2 %v109_v8, %s139_s3 }
  0x1a   :  { %61 = vrot.lane.b32.xlu0 %v110_v9, %s140_s8  ;;  %67 = vrot.lane.b32.xlu1 %v111_v10, %s141_s9 }
  0x1b   :  { %73 = vrot.lane.b32.xlu2 %v112_v11, %s142_s12 }
  0x22   :  { %79 = vrot.lane.b32.xlu0 %v113_v12, %s143_s17  ;;  %85 = vrot.lane.b32.xlu1 %v114_v13, %s144_s18 }
  0x23   :  { %91 = vrot.lane.b32.xlu2 %v115_v14, %s145_s21 }
  0x5d   :  { %v32_v16 = vpop.permute.xlu2 %31  }
  0x65   :  { %v38_v17 = vpop.permute.xlu2 %37  }
  0x6d   :  { %v56_v18 = vpop.permute.xlu2 %55  }
  0x74   :  { %v8_v19 = vpop.permute.xlu0 %7   ;;  %v20_v20 = vpop.permute.xlu1 %19  }
  0x75   :  { %10 = vst.msk [vmem:[#allocation0] sm:$0x1] %vm9_vm1, %v8_v19   ;;  %v74_v21 = vpop.permute.xlu2 %73  }
  0x7c   :  { %v14_v22 = vpop.permute.xlu0 %13   ;;  %v26_v23 = vpop.permute.xlu1 %25  }
  0x7d   :  { %16 = vst.msk [vmem:[#allocation0] sm:$0x1] %vm15_vm2, %v14_v22   ;;  %v92_v24 = vpop.permute.xlu2 %91  }
  0x7e   :  { %22 = vst.msk [vmem:[#allocation0] sm:$0x1] %vm21_vm3, %v20_v20  }
  0x7f   :  { %28 = vst.msk [vmem:[#allocation0] sm:$0x1] %vm27_vm4, %v26_v23  }
  0x80   :  { %34 = vst.msk [vmem:[#allocation0] sm:$0x1] %vm33_vm5, %v32_v16  }
  0x81   :  { %40 = vst.msk [vmem:[#allocation0] sm:$0x1] %vm39_vm6, %v38_v17  }
  0x84   :  { %v44_v25 = vpop.permute.xlu0 %43   ;;  %v50_v26 = vpop.permute.xlu1 %49  }
  0x85   :  { %46 = vst.msk [vmem:[#allocation0] sm:$0x1] %vm45_vm7, %v44_v25  }
  0x86   :  { %52 = vst.msk [vmem:[#allocation0] sm:$0x1] %vm51_vm8, %v50_v26  }
  0x87   :  { %58 = vst.msk [vmem:[#allocation0] sm:$0x1] %vm57_vm9, %v56_v18  }
  0x8c   :  { %v62_v27 = vpop.permute.xlu0 %61   ;;  %v68_v28 = vpop.permute.xlu1 %67  }
  0x8d   :  { %64 = vst.msk [vmem:[#allocation0] sm:$0x1] %vm63_vm10, %v62_v27  }
  0x8e   :  { %70 = vst.msk [vmem:[#allocation0] sm:$0x1] %vm69_vm11, %v68_v28  }
  0x8f   :  { %76 = vst.msk [vmem:[#allocation0] sm:$0x1] %vm75_vm12, %v74_v21  }
  0x94   :  { %v80_v29 = vpop.permute.xlu0 %79   ;;  %v86_v30 = vpop.permute.xlu1 %85  }
  0x95   :  { %82 = vst.msk [vmem:[#allocation0] sm:$0x1] %vm81_vm13, %v80_v29  }
  0x96   :  { %88 = vst.msk [vmem:[#allocation0] sm:$0x1] %vm87_vm14, %v86_v30  }
  0x97   :  { %94 = vst.msk [vmem:[#allocation0] sm:$0x1] %vm93_vm15, %v92_v24  }
  0x9e   :  { %v97_v31 = vld [vmem:[#allocation0] sm:$0x1] }
  0x9f   :  { %100 = vst [vmem:[%s208_s1] sm:$0x1] %v97_v31 }

// kernel: _forward_impl.1
= control target key start
LH: loop header
LB: loop body
LE: loop exit
PB: predicated region body
PF: predicated region fallthrough
CT: control target
= control target key end

     0   :  { %s49_s0 = inlined_call_operand.vmem [shape: f32[8,128], index: 0, kind: input, shape index: {}, may-alias: {0,2}]   ;;  %s50_s1 = inlined_call_operand.vmem [shape: f32[1,128], index: 1, kind: input, shape index: {}]   ;;  %s51_s2 = inlined_call_operand.vmem [shape: f32[8,128], index: 2, kind: output, shape index: {}, may-alias: {0,2}]  }
   0x1   :  { %v11_v0 = vld [vmem:[%s49_s0] sm:$0xff] }
   0x2   :  { %v24_v1 = vld [vmem:[%s50_s1] ss:$0 sm:$0xff]  ;;  %v23_v2 = vadd.f32 -0.5, %v11_v0 }
   0x4   :  { %v17_v3 = vmul.f32 %v24_v1, %v23_v2 }
   0x6   :  { %18 = vst [vmem:[%s51_s2] sm:$0xff] %v17_v3 }

</bundles_post_ra>
